<compile_context>
chip_gen: v7x
topology: tpu7x:2x2x1
jax: 0.10.0
libtpu: 0.0.40
codegen_flags: <defaults>
</compile_context>

<pallas_src>
import functools

import jax
import jax.numpy as jnp
from jax import lax
from jax.experimental import pallas as pl
from jax.experimental.pallas import tpu as pltpu


# ----------------------------------------------------------------------------
# Fused kernel: seg-CE partial sum per N tile + cls-CE sum + transform reg sum
# ----------------------------------------------------------------------------
def _fused_loss_kernel(seg_logit_ref, seg_label_ref, cls_logit_ref,
                       cls_label_ref, trans_ref,
                       seg_out_ref, cls_out_ref, reg_out_ref,
                       *, n_total, tile_n):
    # ------------- segmentation cross-entropy: partial sum for this N tile ---
    logit = seg_logit_ref[...].astype(jnp.float32)           # (B, C, Tn)
    label = seg_label_ref[...]                               # (B, 1, Tn) int32
    b, c, tn = logit.shape

    m = jnp.max(logit, axis=1, keepdims=True)                # (B, 1, Tn)
    z = logit - m
    lse = jnp.log(jnp.sum(jnp.exp(z), axis=1, keepdims=True))       # (B, 1, Tn)
    cls_idx = lax.broadcasted_iota(jnp.int32, (b, c, tn), 1)
    # picked_z = z[label]; never materialize the full logprob tensor.
    picked_z = jnp.sum(jnp.where(cls_idx == label, z, 0.0),
                       axis=1, keepdims=True)                # (B, 1, Tn)
    nll = lse - picked_z                                     # (B, 1, Tn)
    if n_total % tile_n != 0:   # mask padded tail columns of the last tile
        n_base = pl.program_id(0) * tile_n
        col = lax.broadcasted_iota(jnp.int32, (1, 1, tn), 2)
        nll = jnp.where(n_base + col < n_total, nll, 0.0)
    seg_out_ref[...] = jnp.sum(jnp.sum(nll, axis=2, keepdims=True),
                               axis=0, keepdims=True)        # (1, 1, 1)

    # ------------- tiny side losses: only on grid step 0 ---------------------
    is_first = pl.program_id(0) == 0

    @pl.when(is_first)
    def _():
        # classification cross-entropy (B x C_cls elements; VPU/EUP only)
        clogit = cls_logit_ref[...].astype(jnp.float32)      # (B, Cc)
        clabel = cls_label_ref[...]                          # (B, 1) int32
        cb, cc = clogit.shape
        cm = jnp.max(clogit, axis=-1, keepdims=True)
        cz = clogit - cm
        clse = jnp.log(jnp.sum(jnp.exp(cz), axis=-1, keepdims=True))  # (B, 1)
        cidx = lax.broadcasted_iota(jnp.int32, (cb, cc), 1)
        cpicked = jnp.sum(jnp.where(cidx == clabel, cz, 0.0),
                          axis=-1, keepdims=True)            # (B, 1)
        cnll_sum = jnp.sum(clse - cpicked, axis=0, keepdims=True)     # (1, 1)
        cls_out_ref[...] = cnll_sum.reshape(1, 1, 1)

        # transform regularizer (tiny K x K; skip the MXU)
        t = trans_ref[...].astype(jnp.float32)               # (B, K, K)
        _, k, _ = t.shape
        # (T^T T)[b, i, j] = sum_r T[b, r, i] * T[b, r, j] -- VPU bcast + sum.
        tnorm = jnp.sum(t[:, :, :, None] * t[:, :, None, :], axis=1)  # (B, K, K)
        i_idx = lax.broadcasted_iota(jnp.int32, (k, k), 0)
        j_idx = lax.broadcasted_iota(jnp.int32, (k, k), 1)
        eye = (i_idx == j_idx).astype(jnp.float32)
        diff = tnorm - eye[None, :, :]
        sq = diff * diff
        reg_out_ref[...] = jnp.sum(
            jnp.sum(jnp.sum(sq, axis=2, keepdims=True), axis=1, keepdims=True),
            axis=0, keepdims=True)                           # (1, 1, 1)

    @pl.when(jnp.logical_not(is_first))
    def _():
        # Other blocks contribute zero so the wrapper can simply sum partials.
        cls_out_ref[...] = jnp.zeros_like(cls_out_ref)
        reg_out_ref[...] = jnp.zeros_like(reg_out_ref)


# ----------------------------------------------------------------------------
# Wrapper
# ----------------------------------------------------------------------------
def _choose_tile_n(n, b, c, bytes_cap=4 << 20):
    """Pick a lane-dense N tile (multiple of 128) bounded to ~4 MiB of f32 so
    double-buffered input blocks stay well inside v7x's 32 MiB scoped VMEM."""
    if n <= 1024:
        return n                          # whole axis (equal-full-dim block)
    per_col = max(b * c * 4, 1)           # f32 bytes per point column
    t = max(128, min(((bytes_cap // per_col) // 128) * 128, 2048))
    return n if t >= n else t


def dgcnn_part_seg_loss(preds, labels, *, reg_weight, cls_loss_weight,
                        seg_loss_weight, tile_n=None):
    assert seg_loss_weight >= 0.0
    seg_logit = preds["seg_logit"]                         # (B, C, N) torch layout
    seg_label = labels["seg_label"].astype(jnp.int32)      # (B, N)
    B, C, N = seg_logit.shape
    # TODO(synk): F.cross_entropy's default ignore_index=-100 is not handled;
    # labels are assumed to be valid class ids in [0, C).

    has_cls = cls_loss_weight > 0.0
    has_reg = reg_weight > 0.0

    if has_cls:
        cls_logit = preds["cls_logit"]                     # (B, C_cls)
        cls_label = labels["cls_label"].astype(jnp.int32).reshape(B, 1)
    else:  # tiny dummies so the fused kernel keeps a fixed arity
        cls_logit = jnp.zeros((B, 1), jnp.float32)
        cls_label = jnp.zeros((B, 1), jnp.int32)
    trans = preds["trans_input"] if has_reg else jnp.zeros((B, 1, 1), jnp.float32)

    if tile_n is None:
        tile_n = _choose_tile_n(N, B, C)
    grid_n = pl.cdiv(N, tile_n)

    # Give the label a unit "class" axis so it broadcasts directly against the
    # (B, C, Tn) logits inside the kernel (no in-kernel relayout).
    seg_label3 = seg_label.reshape(B, 1, N)

    kernel = functools.partial(_fused_loss_kernel, n_total=N, tile_n=tile_n)
    out11 = jax.ShapeDtypeStruct((grid_n, 1, 1), jnp.float32)
    out_spec = pl.BlockSpec((1, 1, 1), lambda i: (i, 0, 0))

    seg_p, cls_p, reg_p = pl.pallas_call(
        kernel,
        grid=(grid_n,),
        in_specs=(
            pl.BlockSpec((B, C, tile_n), lambda i: (0, 0, i)),   # seg_logit tile
            pl.BlockSpec((B, 1, tile_n), lambda i: (0, 0, i)),   # seg_label tile
            pl.BlockSpec(cls_logit.shape, lambda i: (0, 0)),     # resident
            pl.BlockSpec(cls_label.shape, lambda i: (0, 0)),     # resident
            pl.BlockSpec(trans.shape, lambda i: (0, 0, 0)),      # resident
        ),
        out_specs=(out_spec, out_spec, out_spec),
        out_shape=(out11, out11, out11),
        compiler_params=pltpu.CompilerParams(
            dimension_semantics=("parallel",)),                  # v7x: 2 TCs
    )(seg_logit, seg_label3, cls_logit, cls_label, trans)

    seg_loss = jnp.sum(seg_p[:, 0, 0]) / float(B * N)
    loss_dict = {"seg_loss": seg_loss * seg_loss_weight}
    if has_cls:
        # NOTE: matching the PyTorch module, cls_loss is NOT scaled by
        # cls_loss_weight in the returned dict.
        loss_dict["cls_loss"] = jnp.sum(cls_p[:, 0, 0]) / float(B)
    if has_reg:
        loss_dict["reg_loss"] = jnp.sum(reg_p[:, 0, 0]) * (0.5 * reg_weight / B)
    return loss_dict


# ----------------------------------------------------------------------------
# Pure-JAX reference (for a sanity check)
# ----------------------------------------------------------------------------
def _ref_loss(preds, labels, *, reg_weight, cls_loss_weight, seg_loss_weight):
    seg_logit = preds["seg_logit"]
    seg_label = labels["seg_label"]
    logp = jax.nn.log_softmax(seg_logit, axis=1)            # (B, C, N)
    nll = -jnp.take_along_axis(logp, seg_label[:, None, :], axis=1)[:, 0, :]
    out = {"seg_loss": jnp.mean(nll) * seg_loss_weight}
    if cls_loss_weight > 0.0:
        clogp = jax.nn.log_softmax(preds["cls_logit"], axis=1)
        cnll = -jnp.take_along_axis(
            clogp, labels["cls_label"][:, None], axis=1)[:, 0]
        out["cls_loss"] = jnp.mean(cnll)
    if reg_weight > 0.0:
        t = preds["trans_input"]
        tn = jnp.einsum("bki,bkj->bij", t, t)
        eye = jnp.eye(tn.shape[-1], dtype=tn.dtype)
        reg = jnp.sum((tn - eye[None]) ** 2)
        out["reg_loss"] = reg * (0.5 * reg_weight / t.shape[0])
    return out


if __name__ == "__main__":
    key = jax.random.PRNGKey(0)
    hp = dict(reg_weight=0.001, cls_loss_weight=0.5, seg_loss_weight=1.0)

    def make_inputs(k, B, C_seg, N, C_cls, K):
        k1, k2, k3, k4, k5 = jax.random.split(k, 5)
        preds = {
            "seg_logit": jax.random.normal(k1, (B, C_seg, N), jnp.float32),
            "cls_logit": jax.random.normal(k3, (B, C_cls), jnp.float32),
            "trans_input": jax.random.normal(k5, (B, K, K), jnp.float32),
        }
        labels = {
            "seg_label": jax.random.randint(k2, (B, N), 0, C_seg, jnp.int32),
            "cls_label": jax.random.randint(k4, (B,), 0, C_cls, jnp.int32),
        }
        return preds, labels

    cases = [
        dict(shapes=dict(B=2, C_seg=4, N=16, C_cls=4, K=3), tile_n=None),  # 1 block
        dict(shapes=dict(B=2, C_seg=4, N=256, C_cls=4, K=3), tile_n=128),  # 2 blocks
        dict(shapes=dict(B=2, C_seg=4, N=200, C_cls=4, K=3), tile_n=128),  # masked tail
    ]
    keys = jax.random.split(key, len(cases))
    for kk, case in zip(keys, cases):
        preds, labels = make_inputs(kk, **case["shapes"])
        got = jax.block_until_ready(
            dgcnn_part_seg_loss(preds, labels, tile_n=case["tile_n"], **hp))
        want = _ref_loss(preds, labels, **hp)
        for name in want:
            g, w = float(got[name]), float(want[name])
            assert abs(g - w) <= 1e-4 * (1.0 + abs(w)), (name, g, w)

    print("KERNEL_OK")
</pallas_src>

<mosaic_0001>
module attributes {stable_mosaic.version = 11 : i64} {
  func.func @_fused_loss_kernel(%arg0: i32, %arg1: memref<2x4x16xf32, #tpu.memory_space<vmem>>, %arg2: memref<2x1x16xi32, #tpu.memory_space<vmem>>, %arg3: memref<2x4xf32, #tpu.memory_space<vmem>>, %arg4: memref<2x1xi32, #tpu.memory_space<vmem>>, %arg5: memref<2x3x3xf32, #tpu.memory_space<vmem>>, %arg6: memref<1x1x1xf32, #tpu.memory_space<vmem>>, %arg7: memref<1x1x1xf32, #tpu.memory_space<vmem>>, %arg8: memref<1x1x1xf32, #tpu.memory_space<vmem>>) attributes {dimension_semantics = [#tpu.dimension_semantics<parallel>], iteration_bounds = array<i64: 1>, scalar_prefetch = 0 : i64, scratch_operands = 0 : i64, tpu.core_type = #tpu.core_type<tc>, window_params = [{transform_indices = @transform_0, window_bounds = array<i64: 2, 4, 16>}, {transform_indices = @transform_1, window_bounds = array<i64: 2, 1, 16>}, {pipeline_mode = #tpu.pipeline_mode<synchronous>, transform_indices = @transform_2, window_bounds = array<i64: 2, 4>}, {pipeline_mode = #tpu.pipeline_mode<synchronous>, transform_indices = @transform_3, window_bounds = array<i64: 2, 1>}, {pipeline_mode = #tpu.pipeline_mode<synchronous>, transform_indices = @transform_4, window_bounds = array<i64: 2, 3, 3>}, {transform_indices = @transform_5, window_bounds = array<i64: 1, 1, 1>}, {transform_indices = @transform_6, window_bounds = array<i64: 1, 1, 1>}, {transform_indices = @transform_7, window_bounds = array<i64: 1, 1, 1>}]} {
    %c0 = arith.constant 0 : index
    %c0_0 = arith.constant 0 : index
    %c0_1 = arith.constant 0 : index
    %0 = vector.load %arg1[%c0, %c0_0, %c0_1] : memref<2x4x16xf32, #tpu.memory_space<vmem>>, vector<2x4x16xf32>
    %c0_2 = arith.constant 0 : index
    %c0_3 = arith.constant 0 : index
    %c0_4 = arith.constant 0 : index
    %1 = vector.load %arg2[%c0_2, %c0_3, %c0_4] : memref<2x1x16xi32, #tpu.memory_space<vmem>>, vector<2x1x16xi32>
    %cst = arith.constant dense<0xFF800000> : vector<2x16xf32>
    %2 = vector.multi_reduction <maximumf>, %0, %cst [1] : vector<2x4x16xf32> to vector<2x16xf32>
    %3 = vector.shape_cast %2 : vector<2x16xf32> to vector<2x1x16xf32>
    %4 = vector.broadcast %3 : vector<2x1x16xf32> to vector<2x4x16xf32>
    %5 = arith.subf %0, %4 : vector<2x4x16xf32>
    %6 = math.exp %5 : vector<2x4x16xf32>
    %cst_5 = arith.constant dense<0.000000e+00> : vector<2x16xf32>
    %7 = vector.multi_reduction <add>, %6, %cst_5 [1] : vector<2x4x16xf32> to vector<2x16xf32>
    %8 = vector.shape_cast %7 : vector<2x16xf32> to vector<2x1x16xf32>
    %9 = math.log %8 : vector<2x1x16xf32>
    %10 = tpu.iota {dimensions = array<i32: 1>} : vector<2x4x16xi32>
    %11 = vector.broadcast %1 : vector<2x1x16xi32> to vector<2x4x16xi32>
    %12 = arith.cmpi eq, %10, %11 : vector<2x4x16xi32>
    %cst_6 = arith.constant 0.000000e+00 : f32
    %13 = vector.broadcast %cst_6 : f32 to vector<2x4x16xf32>
    %14 = arith.select %12, %5, %13 : vector<2x4x16xi1>, vector<2x4x16xf32>
    %cst_7 = arith.constant dense<0.000000e+00> : vector<2x16xf32>
    %15 = vector.multi_reduction <add>, %14, %cst_7 [1] : vector<2x4x16xf32> to vector<2x16xf32>
    %16 = vector.shape_cast %15 : vector<2x16xf32> to vector<2x1x16xf32>
    %17 = arith.subf %9, %16 : vector<2x1x16xf32>
    %cst_8 = arith.constant dense<0.000000e+00> : vector<2x1xf32>
    %18 = vector.multi_reduction <add>, %17, %cst_8 [2] : vector<2x1x16xf32> to vector<2x1xf32>
    %19 = vector.shape_cast %18 : vector<2x1xf32> to vector<2x1x1xf32>
    %cst_9 = arith.constant dense<0.000000e+00> : vector<1x1xf32>
    %20 = vector.multi_reduction <add>, %19, %cst_9 [0] : vector<2x1x1xf32> to vector<1x1xf32>
    %21 = vector.shape_cast %20 : vector<1x1xf32> to vector<1x1x1xf32>
    %c0_10 = arith.constant 0 : index
    %c0_11 = arith.constant 0 : index
    %c0_12 = arith.constant 0 : index
    %22 = vector.load %arg6[%c0_10, %c0_11, %c0_12] : memref<1x1x1xf32, #tpu.memory_space<vmem>>, vector<1x1x1xf32>
    tpu.vector_store %arg6[%c0_10, %c0_11, %c0_12], %21 {strides = array<i32>} : memref<1x1x1xf32, #tpu.memory_space<vmem>>, vector<1x1x1xf32>,
    %c0_i32 = arith.constant 0 : i32
    %23 = arith.cmpi eq, %arg0, %c0_i32 : i32
    %24 = arith.extui %23 : i1 to i32
    %c0_i32_13 = arith.constant 0 : i32
    %25 = arith.cmpi ne, %24, %c0_i32_13 : i32
    scf.if %25 {
      %c0_15 = arith.constant 0 : index
      %c0_16 = arith.constant 0 : index
      %29 = vector.load %arg3[%c0_15, %c0_16] : memref<2x4xf32, #tpu.memory_space<vmem>>, vector<2x4xf32>
      %c0_17 = arith.constant 0 : index
      %c0_18 = arith.constant 0 : index
      %30 = vector.load %arg4[%c0_17, %c0_18] : memref<2x1xi32, #tpu.memory_space<vmem>>, vector<2x1xi32>
      %cst_19 = arith.constant dense<0xFF800000> : vector<2xf32>
      %31 = vector.multi_reduction <maximumf>, %29, %cst_19 [1] : vector<2x4xf32> to vector<2xf32>
      %32 = vector.shape_cast %31 : vector<2xf32> to vector<2x1xf32>
      %33 = vector.broadcast %32 : vector<2x1xf32> to vector<2x4xf32>
      %34 = arith.subf %29, %33 : vector<2x4xf32>
      %35 = math.exp %34 : vector<2x4xf32>
      %cst_20 = arith.constant dense<0.000000e+00> : vector<2xf32>
      %36 = vector.multi_reduction <add>, %35, %cst_20 [1] : vector<2x4xf32> to vector<2xf32>
      %37 = vector.shape_cast %36 : vector<2xf32> to vector<2x1xf32>
      %38 = math.log %37 : vector<2x1xf32>
      %39 = tpu.iota {dimensions = array<i32: 1>} : vector<2x4xi32>
      %40 = vector.broadcast %30 : vector<2x1xi32> to vector<2x4xi32>
      %41 = arith.cmpi eq, %39, %40 : vector<2x4xi32>
      %cst_21 = arith.constant 0.000000e+00 : f32
      %42 = vector.broadcast %cst_21 : f32 to vector<2x4xf32>
      %43 = arith.select %41, %34, %42 : vector<2x4xi1>, vector<2x4xf32>
      %cst_22 = arith.constant dense<0.000000e+00> : vector<2xf32>
      %44 = vector.multi_reduction <add>, %43, %cst_22 [1] : vector<2x4xf32> to vector<2xf32>
      %45 = vector.shape_cast %44 : vector<2xf32> to vector<2x1xf32>
      %46 = arith.subf %38, %45 : vector<2x1xf32>
      %cst_23 = arith.constant dense<0.000000e+00> : vector<1xf32>
      %47 = vector.multi_reduction <add>, %46, %cst_23 [0] : vector<2x1xf32> to vector<1xf32>
      %48 = vector.shape_cast %47 : vector<1xf32> to vector<1x1xf32>
      %49 = vector.shape_cast %48 : vector<1x1xf32> to vector<1x1x1xf32>
      %c0_24 = arith.constant 0 : index
      %c0_25 = arith.constant 0 : index
      %c0_26 = arith.constant 0 : index
      %50 = vector.load %arg7[%c0_24, %c0_25, %c0_26] : memref<1x1x1xf32, #tpu.memory_space<vmem>>, vector<1x1x1xf32>
      tpu.vector_store %arg7[%c0_24, %c0_25, %c0_26], %49 {strides = array<i32>} : memref<1x1x1xf32, #tpu.memory_space<vmem>>, vector<1x1x1xf32>,
      %c0_27 = arith.constant 0 : index
      %c0_28 = arith.constant 0 : index
      %c0_29 = arith.constant 0 : index
      %51 = vector.load %arg5[%c0_27, %c0_28, %c0_29] : memref<2x3x3xf32, #tpu.memory_space<vmem>>, vector<2x3x3xf32>
      %52 = vector.shape_cast %51 : vector<2x3x3xf32> to vector<2x3x3x1xf32>
      %53 = vector.shape_cast %51 : vector<2x3x3xf32> to vector<2x3x1x3xf32>
      %54 = vector.broadcast %52 : vector<2x3x3x1xf32> to vector<2x3x3x3xf32>
      %55 = vector.broadcast %53 : vector<2x3x1x3xf32> to vector<2x3x3x3xf32>
      %56 = arith.mulf %54, %55 : vector<2x3x3x3xf32>
      %cst_30 = arith.constant dense<0.000000e+00> : vector<2x3x3xf32>
      %57 = vector.multi_reduction <add>, %56, %cst_30 [1] : vector<2x3x3x3xf32> to vector<2x3x3xf32>
      %58 = tpu.iota {dimensions = array<i32: 0>} : vector<3x3xi32>
      %59 = tpu.iota {dimensions = array<i32: 1>} : vector<3x3xi32>
      %60 = arith.cmpi eq, %58, %59 : vector<3x3xi32>
      %61 = arith.extui %60 : vector<3x3xi1> to vector<3x3xi32>
      %62 = arith.sitofp %61 : vector<3x3xi32> to vector<3x3xf32>
      %63 = vector.shape_cast %62 : vector<3x3xf32> to vector<1x3x3xf32>
      %64 = vector.broadcast %63 : vector<1x3x3xf32> to vector<2x3x3xf32>
      %65 = arith.subf %57, %64 : vector<2x3x3xf32>
      %66 = arith.mulf %65, %65 : vector<2x3x3xf32>
      %cst_31 = arith.constant dense<0.000000e+00> : vector<2x3xf32>
      %67 = vector.multi_reduction <add>, %66, %cst_31 [2] : vector<2x3x3xf32> to vector<2x3xf32>
      %68 = vector.shape_cast %67 : vector<2x3xf32> to vector<2x3x1xf32>
      %cst_32 = arith.constant dense<0.000000e+00> : vector<2x1xf32>
      %69 = vector.multi_reduction <add>, %68, %cst_32 [1] : vector<2x3x1xf32> to vector<2x1xf32>
      %70 = vector.shape_cast %69 : vector<2x1xf32> to vector<2x1x1xf32>
      %cst_33 = arith.constant dense<0.000000e+00> : vector<1x1xf32>
      %71 = vector.multi_reduction <add>, %70, %cst_33 [0] : vector<2x1x1xf32> to vector<1x1xf32>
      %72 = vector.shape_cast %71 : vector<1x1xf32> to vector<1x1x1xf32>
      %c0_34 = arith.constant 0 : index
      %c0_35 = arith.constant 0 : index
      %c0_36 = arith.constant 0 : index
      %73 = vector.load %arg8[%c0_34, %c0_35, %c0_36] : memref<1x1x1xf32, #tpu.memory_space<vmem>>, vector<1x1x1xf32>
      tpu.vector_store %arg8[%c0_34, %c0_35, %c0_36], %72 {strides = array<i32>} : memref<1x1x1xf32, #tpu.memory_space<vmem>>, vector<1x1x1xf32>,
    } else {
    }
    %true = arith.constant true
    %26 = arith.xori %23, %true : i1
    %27 = arith.extui %26 : i1 to i32
    %c0_i32_14 = arith.constant 0 : i32
    %28 = arith.cmpi ne, %27, %c0_i32_14 : i32
    scf.if %28 {
      %cst_15 = arith.constant 0.000000e+00 : f32
      %29 = vector.broadcast %cst_15 : f32 to vector<1x1x1xf32>
      %c0_16 = arith.constant 0 : index
      %c0_17 = arith.constant 0 : index
      %c0_18 = arith.constant 0 : index
      %30 = vector.load %arg7[%c0_16, %c0_17, %c0_18] : memref<1x1x1xf32, #tpu.memory_space<vmem>>, vector<1x1x1xf32>
      tpu.vector_store %arg7[%c0_16, %c0_17, %c0_18], %29 {strides = array<i32>} : memref<1x1x1xf32, #tpu.memory_space<vmem>>, vector<1x1x1xf32>,
      %cst_19 = arith.constant 0.000000e+00 : f32
      %31 = vector.broadcast %cst_19 : f32 to vector<1x1x1xf32>
      %c0_20 = arith.constant 0 : index
      %c0_21 = arith.constant 0 : index
      %c0_22 = arith.constant 0 : index
      %32 = vector.load %arg8[%c0_20, %c0_21, %c0_22] : memref<1x1x1xf32, #tpu.memory_space<vmem>>, vector<1x1x1xf32>
      tpu.vector_store %arg8[%c0_20, %c0_21, %c0_22], %31 {strides = array<i32>} : memref<1x1x1xf32, #tpu.memory_space<vmem>>, vector<1x1x1xf32>,
    } else {
    }
    return
  }
  func.func @transform_0(%arg0: i32) -> (i32, i32, i32) {
    %c0_i32 = arith.constant 0 : i32
    %c0_i32_0 = arith.constant 0 : i32
    %c0_i32_1 = arith.constant 0 : i32
    return %c0_i32, %c0_i32_0, %arg0 : i32, i32, i32
  }
  func.func @transform_1(%arg0: i32) -> (i32, i32, i32) {
    %c0_i32 = arith.constant 0 : i32
    %c0_i32_0 = arith.constant 0 : i32
    %c0_i32_1 = arith.constant 0 : i32
    return %c0_i32, %c0_i32_0, %arg0 : i32, i32, i32
  }
  func.func @transform_2(%arg0: i32) -> (i32, i32) {
    %c0_i32 = arith.constant 0 : i32
    %c0_i32_0 = arith.constant 0 : i32
    %c0_i32_1 = arith.constant 0 : i32
    return %c0_i32, %c0_i32_0 : i32, i32
  }
  func.func @transform_3(%arg0: i32) -> (i32, i32) {
    %c0_i32 = arith.constant 0 : i32
    %c0_i32_0 = arith.constant 0 : i32
    %c0_i32_1 = arith.constant 0 : i32
    return %c0_i32, %c0_i32_0 : i32, i32
  }
  func.func @transform_4(%arg0: i32) -> (i32, i32, i32) {
    %c0_i32 = arith.constant 0 : i32
    %c0_i32_0 = arith.constant 0 : i32
    %c0_i32_1 = arith.constant 0 : i32
    %c0_i32_2 = arith.constant 0 : i32
    return %c0_i32, %c0_i32_0, %c0_i32_1 : i32, i32, i32
  }
  func.func @transform_5(%arg0: i32) -> (i32, i32, i32) {
    %c0_i32 = arith.constant 0 : i32
    %c0_i32_0 = arith.constant 0 : i32
    %c0_i32_1 = arith.constant 0 : i32
    return %arg0, %c0_i32, %c0_i32_0 : i32, i32, i32
  }
  func.func @transform_6(%arg0: i32) -> (i32, i32, i32) {
    %c0_i32 = arith.constant 0 : i32
    %c0_i32_0 = arith.constant 0 : i32
    %c0_i32_1 = arith.constant 0 : i32
    return %arg0, %c0_i32, %c0_i32_0 : i32, i32, i32
  }
  func.func @transform_7(%arg0: i32) -> (i32, i32, i32) {
    %c0_i32 = arith.constant 0 : i32
    %c0_i32_0 = arith.constant 0 : i32
    %c0_i32_1 = arith.constant 0 : i32
    return %arg0, %c0_i32, %c0_i32_0 : i32, i32, i32
  }
}

</mosaic_0001>

<bundles_post_ra>
// kernel: tpu_custom_call.1
= control target key start
LH: loop header
LB: loop body
LE: loop exit
PB: predicated region body
PF: predicated region fallthrough
CT: control target
= control target key end

     0   :  { %13 = vsyncpa [#allocation3], 0  ;;  %vm114_vm0 = vcmask 25600   ;;  %v68_v1 = vlaneseq  ;;  %v455_v3 = vmov 0   ;;  %v456_v5 = vmov 1966171168   ;;  %s651_s0 = inlined_call_operand.vmem [shape: f32[2,4,16], index: 0, kind: input, shape index: {}]   ;;  %s652_s1 = inlined_call_operand.vmem [shape: s32[2,1,16], index: 1, kind: input, shape index: {}]   ;;  %s653_s2 = inlined_call_operand.vmem [shape: f32[2,4], index: 2, kind: input, shape index: {}]   ;;  %s654_s3 = inlined_call_operand.vmem [shape: s32[2,1], index: 3, kind: input, shape index: {}]   ;;  %s655_s4 = inlined_call_operand.vmem [shape: f32[2,3,3], index: 4, kind: input, shape index: {}]   ;;  %s656_s5 = inlined_call_operand.hbm [shape: f32[1,1,1], index: 5, kind: output, shape index: {0}]   ;;  %s657_s6 = inlined_call_operand.hbm [shape: f32[1,1,1], index: 6, kind: output, shape index: {1}]   ;;  %s658_s7 = inlined_call_operand.hbm [shape: f32[1,1,1], index: 7, kind: output, shape index: {2}]  }
   0x1   :  { %v504_v0 = vld [vmem:[%s653_s2] sm:$0x3]  ;;  %371 = vset.pattern.permute.xlu1 %v455_v3  ;;  %372 = vset.pattern.permute.xlu0 %v455_v3  ;;  %v193_v6 = vunpack.c.l.s4 %v456_v5 }
   0x2   :  { %v115_v2 = vsel %vm114_vm0, %v504_v0, -inf  ;;  %v508_v4 = vshrl.u32 %v68_v1, 7  ;;  %v146_v7 = vld [vmem:[%s655_s4] sm:$0x7] }
   0x3   :  { %116 = vmax.xlane.f32.xlu0 %v115_v2 }
   0x4   :  { %14 = vsyncpa [#allocation5], 0  ;;  %v157_v8 = vsub.s32 1, %v508_v4  ;;  %v194_v9 = vunpack.c.0.s8 %v193_v6  ;;  %v515_v10 = vsub.s32 0, %v508_v4  ;;  %v147_v11 = vld [vmem:[%s655_s4 + $0x4] sm:$0x7] }
   0x5   :  { %v164_v26 = vsub.s32 2, %v508_v4  ;;  %v113_v28 = vld [vmem:[%s654_s3] sm:$0x3]  ;;  %v540_v29 = vand.u32 127, %v68_v1  ;;  %vm29_vm2 = vcmask 125952   ;;  %vm274_vm5 = vcmask 18432  }
   0x6   :  { %v158_v12 = vrot.slane %v146_v7, %v157_v8  ;;  %v197_v13 = vsub.s32 %v194_v9, %v508_v4  ;;  %v172_v15 = vrot.slane %v147_v11, %v515_v10  ;;  %v179_v20 = vrot.slane %v147_v11, %v157_v8  ;;  %v25_v38 = vld [vmem:[%s651_s0] sm:$0xf]  ;;  %v26_v39 = vld [vmem:[%s651_s0 + $0x4] sm:$0xf] }
   0x7   :  { %v151_v31 = vrot.slane %v146_v7, %v515_v10  ;;  %v165_v32 = vrot.slane %v146_v7, %v164_v26  ;;  %vm285_vm1 = vcmp.eq.s32.totalorder %v508_v4, %v540_v29  ;;  %v186_v35 = vrot.slane %v147_v11, %v164_v26  ;;  %v362_v3 = vld [vmem:[%s652_s1] ss:$0 sm:$0xff] }
   0x8   :  { %v198_v14 = vrot.slane %v146_v7, %v197_v13  ;;  %160 = vbcast.lane.b32.xlu1 %v158_v12, 256  ;;  %v221_v16 = vrot.slane %v147_v11, %v197_v13  ;;  %v30_v40 = vsel %vm29_vm2, %v25_v38, -inf  ;;  %v37_v41 = vsel %vm29_vm2, %v26_v39, -inf  ;;  %v363_v7 = vld [vmem:[%s652_s1 + $0x1] ss:$0 sm:$0xff]  ;;  %s458_s1 = smov [#allocation2]  }
   0x9   :  { %v31_v42 = vrot.slane %v30_v40, 4  ;;  %v38_v43 = vrot.slane %v37_v41, 4  ;;  %vm78_vm3 = vcmp.eq.s32.totalorder %v508_v4, %v362_v3  ;;  %vm79_vm4 = vcmp.eq.s32.totalorder %v508_v4, %v363_v7  ;;  %s327_s13 = sshll.u32 %s458_s1, 4  ;;  %s328_s13 = int_to_ptr.vmem [resolvable:$true] %s327_s13 }
   0xa   :  { %v199_v17 = vcombine.high %v198_v14, %v198_v14  ;;  %v522_v18 = vrot.slane %v221_v16, %v197_v13  ;;  %v222_v19 = vcombine.high %v221_v16, %v221_v16  ;;  %v535_v27 = vrot.slane %v198_v14, %v197_v13  ;;  %s385_s14 = scalar_lea.vmem %s328_s13, 16  ;;  %s389_s15 = scalar_lea.vmem %s328_s13, 32 }
   0xb   :  { %v32_v44 = vmax.f32 %v30_v40, %v31_v42  ;;  %v39_v45 = vmax.f32 %v37_v41, %v38_v43  ;;  %vm98_vm7 = vcmask 130048   ;;  %vm298_vm8 = vcmask 1042432   ;;  %p386_p0 = scmp.ne.s32.totalorder %s328_s13, %s385_s14  ;;  %p390_p1 = scmp.lt.s32.totalorder %s328_s13, %s328_s13 }
   0xc   :  { %174 = vbcast.lane.b32.xlu1 %v172_v15, 256  ;;  %v524_v21 = vrot.slane %v199_v17, %v197_v13  ;;  %v253_v22 = vrot.slane %v522_v18, %v515_v10  ;;  %v528_v23 = vrot.slane %v222_v19, %v197_v13  ;;  %v241_v30 = vrot.slane %v535_v27, %v515_v10  ;;  %p391_p2 = scmp.lt.s32.totalorder %s389_s15, %s385_s14 }
   0xd   :  { %v214_v33 = vcombine.high %v535_v27, %v535_v27  ;;  %v237_v36 = vcombine.high %v522_v18, %v522_v18  ;;  %v33_v46 = vrot.slane %v32_v44, 2  ;;  %v40_v47 = vrot.slane %v39_v45, 2 }
   0xe   :  { %v245_v24 = vrot.slane %v524_v21, %v515_v10  ;;  %v257_v25 = vrot.slane %v528_v23, %v515_v10  ;;  %vm106_vm9 = vcmask 0   ;;  %vm137_vm10 = vcmask 1041408   ;;  %p392_p3 = por %p391_p2, %p390_p1 }
   0xf   :  { %v550_v34 = vrot.slane %v214_v33, %v515_v10  ;;  %v555_v37 = vrot.slane %v237_v36, %v515_v10  ;;  %v34_v48 = vmax.f32 %v32_v44, %v33_v46  ;;  %v41_v49 = vmax.f32 %v39_v45, %v40_v47 }
  0x10   :  { %181 = vbcast.lane.b32.xlu1 %v179_v20, 256  ;;  %p393_p4 = pnand %p392_p3, %p386_p0 }
  0x11   :  { %v35_v50 = vrot.slane %v34_v48, 1  ;;  %v42_v51 = vrot.slane %v41_v49, 1 }
  0x13   :  { %v36_v52 = vmax.f32 %v34_v48, %v35_v50  ;;  %v43_v53 = vmax.f32 %v41_v49, %v42_v51 }
  0x14   :  { %129 = vperm.xlu1 %371, %v113_v28  }
  0x15   :  { %v44_v54 = vsub.f32 %v25_v38, %v36_v52  ;;  %v45_v55 = vsub.f32 %v26_v39, %v43_v53 }
  0x17   :  { %v46_v56 = vmul.f32 1.442695, %v44_v54  ;;  %v48_v57 = vmul.f32 1.442695, %v45_v55  ;;  %v80_v12 = vsel %vm78_vm3, %v44_v54, 0.0  ;;  %v81_v17 = vsel %vm79_vm4, %v45_v55, 0.0 }
  0x18   :  { %167 = vbcast.lane.b32.xlu1 %v165_v32, 256  ;;  %v82_v18 = vsel %vm29_vm2, %v80_v12, 0.0  ;;  %v89_v28 = vsel %vm29_vm2, %v81_v17, 0.0 }
  0x19   :  { %153 = vbcast.lane.b32.xlu0 %v151_v31, 256  ;;  %373 = vpow2.f32 %v46_v56  ;;  %v83_v31 = vrot.slane %v82_v18, 4  ;;  %v90_v33 = vrot.slane %v89_v28, 4  ;;  %v457_v56 = vmov 0.0  }
  0x1a   :  { %375 = vpow2.f32 %v48_v57  ;;  %v364_v10 = vsel %vm285_vm1, 1.0, %v457_v56 }
  0x1b   :  { %v84_v36 = vadd.f32 %v83_v31, %v82_v18  ;;  %v91_v39 = vadd.f32 %v90_v33, %v89_v28 }
  0x1c   :  { %188 = vbcast.lane.b32.xlu1 %v186_v35, 256 }
  0x1d   :  { %v92_v43 = vrot.slane %v91_v39, 2 }
  0x23   :  { %v374_v58 = vpop.eup %373 }
  0x24   :  { %v376_v59 = vpop.eup %375  ;;  %v50_v60 = vsel %vm29_vm2, %v374_v58, 0.0 }
  0x25   :  { %v57_v61 = vsel %vm29_vm2, %v376_v59, 0.0  ;;  %v51_v62 = vrot.slane %v50_v60, 4 }
  0x26   :  { %v58_v63 = vrot.slane %v57_v61, 4 }
  0x27   :  { %v52_v2 = vadd.f32 %v51_v62, %v50_v60 }
  0x28   :  { %v59_v5 = vadd.f32 %v58_v63, %v57_v61 }
  0x29   :  { %v53_v8 = vrot.slane %v52_v2, 2 }
  0x2a   :  { %v60_v11 = vrot.slane %v59_v5, 2 }
  0x2b   :  { %v54_v14 = vadd.f32 %v53_v8, %v52_v2 }
  0x2c   :  { %v61_v20 = vadd.f32 %v60_v11, %v59_v5 }
  0x2d   :  { %v55_v26 = vrot.slane %v54_v14, 1 }
  0x2e   :  { %v62_v32 = vrot.slane %v61_v20, 1 }
  0x2f   :  { %v56_v35 = vadd.f32 %v55_v26, %v54_v14 }
  0x30   :  { %v63_v38 = vadd.f32 %v62_v32, %v61_v20 }
  0x31   :  { %377 = vlog2.f32 %v56_v35 }
  0x32   :  { %379 = vlog2.f32 %v63_v38 }
  0x3b   :  { %v378_v53 = vpop.eup %377 }
  0x3c   :  { %v65_v59 = vmul.f32 0.6931472, %v378_v53 }
  0x7a   :  { %v161_v1 = vpop.permute.xlu1 %160 }
  0x7b   :  { %v269_v41 = vmul.f32 %v245_v24, %v161_v1  ;;  %v93_v24 = vadd.f32 %v92_v43, %v91_v39 }
  0x7d   :  { %v94_v27 = vrot.slane %v93_v24, 1 }
  0x7e   :  { %v175_v6 = vpop.permute.xlu1 %174 }
  0x7f   :  { %v271_v9 = vmul.f32 %v253_v22, %v175_v6  ;;  %v95_v2 = vadd.f32 %v94_v27, %v93_v24 }
  0x81   :  { %v280_v15 = vsel %vm274_vm5, %v271_v9, 0.0 }
  0x82   :  { %v182_v13 = vpop.permute.xlu1 %181 }
  0x83   :  { %v272_v16 = vmul.f32 %v257_v25, %v182_v13  ;;  %v85_v25 = vrot.slane %v84_v36, 2 }
  0x85   :  { %v281_v19 = vsel %vm274_vm5, %v272_v16, 0.0  ;;  %v86_v46 = vadd.f32 %v85_v25, %v84_v36 }
  0x86   :  { %v282_v22 = vadd.f32 %v281_v19, %v280_v15 }
  0x87   :  { %v87_v52 = vrot.slane %v86_v46, 1 }
  0x89   :  { %v88_v60 = vadd.f32 %v87_v52, %v86_v46 }
  0x8b   :  { %v96_v4 = vsub.f32 %v65_v59, %v88_v60 }
  0x90   :  { %v117_v23 = vpop.xlane.xlu0 %116 }
  0x91   :  { %v118_v40 = vsub.f32 %v504_v0, %v117_v23  ;;  %v276_v0 = vsel %vm274_vm5, %v269_v41, 0.0 }
  0x93   :  { %v119_v42 = vmul.f32 1.442695, %v118_v40  ;;  %v130_v44 = vpop.permute.xlu1 %129 }
  0x94   :  { %v154_v45 = vpop.permute.xlu0 %153  ;;  %vm131_vm6 = vcmp.eq.s32.totalorder %v540_v29, %v130_v44 }
  0x95   :  { %381 = vpow2.f32 %v119_v42  ;;  %v268_v47 = vmul.f32 %v241_v30, %v154_v45  ;;  %v132_v48 = vsel %vm131_vm6, %v118_v40, 0.0  ;;  %v380_v30 = vpop.eup %379 }
  0x96   :  { %v133_v21 = vsel %vm114_vm0, %v132_v48, 0.0 }
  0x97   :  { %v275_v49 = vsel %vm274_vm5, %v268_v47, 0.0  ;;  %v168_v51 = vpop.permute.xlu1 %167  ;;  %134 = vadd.xlane.f32.xlu0 %v133_v21 }
  0x98   :  { %v277_v50 = vadd.f32 %v276_v0, %v275_v49  ;;  %v270_v54 = vmul.f32 %v550_v34, %v168_v51  ;;  %v67_v34 = vmul.f32 0.6931472, %v380_v30 }
  0x9a   :  { %v278_v55 = vsel %vm274_vm5, %v270_v54, 0.0  ;;  %v97_v9 = vsub.f32 %v67_v34, %v95_v2 }
  0x9b   :  { %v279_v57 = vadd.f32 %v278_v55, %v277_v50  ;;  %v189_v58 = vpop.permute.xlu1 %188 }
  0x9c   :  { %v273_v61 = vmul.f32 %v555_v37, %v189_v58  ;;  %v99_v37 = vsel %vm98_vm7, %v96_v4, 0.0  ;;  %v102_v12 = vsel %vm98_vm7, %v97_v9, 0.0 }
  0x9d   :  { %v288_v62 = vsub.f32 %v279_v57, %v364_v10 }
  0x9e   :  { %v283_v1 = vsel %vm274_vm5, %v273_v61, 0.0 }
  0x9f   :  { %v382_v63 = vpop.eup %381  ;;  %v284_v3 = vadd.f32 %v283_v1, %v282_v22  ;;  %v290_v6 = vmul.f32 %v288_v62, %v288_v62 }
  0xa0   :  { %v121_v5 = vsel %vm114_vm0, %v382_v63, 0.0 }
  0xa1   :  { %122 = vadd.xlane.f32.xlu1 %v121_v5  ;;  %v292_v29 = vsel %vm274_vm5, %v290_v6, 0.0  ;;  %v289_v7 = vsub.f32 %v284_v3, %v364_v10 }
  0xa2   :  { %293 = vadd.xlane.f32.xlu0 %v292_v29 }
  0xa3   :  { %v291_v8 = vmul.f32 %v289_v7, %v289_v7 }
  0xa5   :  { %v295_v11 = vsel %vm274_vm5, %v291_v8, 0.0 }
  0xa6   :  { %296 = vadd.xlane.f32.xlu1 %v295_v11  ;;  %100 = vadd.xlane.f32.xlu0 %v99_v37 }
  0xaa   :  { %103 = vadd.xlane.f32.xlu1 %v102_v12 }
 0x124   :  { %v135_v13 = vpop.xlane.xlu0 %134 }
 0x12e   :  { %v123_v14 = vpop.xlane.xlu1 %122 }
 0x12f   :  { %383 = vlog2.f32 %v123_v14  ;;  %v294_v15 = vpop.xlane.xlu0 %293 }
 0x130   :  { %v299_v16 = vsel %vm298_vm8, %v294_v15, 0.0 }
 0x131   :  { %v300_v17 = vrot.slane %v299_v16, 4 }
 0x133   :  { %v301_v18 = vadd.f32 %v300_v17, %v299_v16  ;;  %v297_v19 = vpop.xlane.xlu1 %296  ;;  %v101_v28 = vpop.xlane.xlu0 %100 }
 0x134   :  { %v306_v20 = vsel %vm298_vm8, %v297_v19, 0.0 }
 0x135   :  { %v302_v22 = vrot.slane %v301_v18, 2  ;;  %v307_v26 = vrot.slane %v306_v20, 4 }
 0x137   :  { %v303_v31 = vadd.f32 %v302_v22, %v301_v18  ;;  %v308_v32 = vadd.f32 %v307_v26, %v306_v20  ;;  %v104_v33 = vpop.xlane.xlu1 %103 }
 0x138   :  { %v105_v36 = vadd.f32 %v104_v33, %v101_v28 }
 0x139   :  { %v384_v35 = vpop.eup %383  ;;  %v309_v39 = vrot.slane %v308_v32, 2  ;;  %v304_v25 = vrot.slane %v303_v31, 1 }
 0x13a   :  { %v125_v38 = vmul.f32 0.6931472, %v384_v35  ;;  %107 = vst.msk [vmem:[#allocation2] sm:$0x1] %vm106_vm9, %v105_v36 }
 0x13b   :  { %v310_v40 = vadd.f32 %v309_v39, %v308_v32 }
 0x13c   :  { %v136_v23 = vsub.f32 %v125_v38, %v135_v13 }
 0x13d   :  { %396 = shalt.err (!%p393_p4)
}
 0x13e   :  { %s397_s18 = scalar_lea.hbm %s656_s5, 16 }
 0x13f   :  { %p398_p5 = scmp.ne.s32.totalorder %s656_s5, %s397_s18  ;;  %p401_p6 = scmp.lt.u32.totalorder %s397_s18, %s656_s5 }
 0x141   :  { %p403_p7 = pnand %p401_p6, %p398_p5 }
 0x143   :  { %406 = shalt.err (!%p403_p7)
}
 0x144   :  { %330 = dma.vmem_to_hbm [thread:$0]  %s328_s13, 16, %s656_s5, [#allocation3]   ;;  %v138_v41 = vsel %vm137_vm10, %v136_v23, 0.0  ;;  %v311_v42 = vrot.slane %v310_v40, 1  ;;  %v305_v44 = vadd.f32 %v304_v25, %v303_v31 }
 0x145   :  { %v139_v43 = vrot.slane %v138_v41, 4  ;;  %s459_s25 = smov [#allocation4]   ;;  %s460_s27 = smov [#allocation6]  }
 0x146   :  { %v312_v45 = vadd.f32 %v311_v42, %v310_v40  ;;  %s337_s26 = sshll.u32 %s459_s25, 4  ;;  %s347_s2 = sshll.u32 %s460_s27, 4  ;;  %s338_s26 = int_to_ptr.vmem [resolvable:$true] %s337_s26  ;;  %s618_s2 = int_to_ptr.vmem [resolvable:$true] %s347_s2 }
 0x147   :  { %v140_v46 = vadd.f32 %v139_v43, %v138_v41  ;;  %s407_s5 = scalar_lea.vmem %s338_s26, 16  ;;  %s411_s28 = scalar_lea.vmem %s338_s26, 32 }
 0x148   :  { %v313_v47 = vadd.f32 %v312_v45, %v305_v44  ;;  %p408_p8 = scmp.ne.s32.totalorder %s338_s26, %s407_s5  ;;  %p412_p9 = scmp.lt.s32.totalorder %s338_s26, %s338_s26 }
 0x149   :  { %v141_v48 = vrot.slane %v140_v46, 2  ;;  %p413_p10 = scmp.lt.s32.totalorder %s411_s28, %s407_s5 }
 0x14a   :  { %314 = vst.msk [vmem:[#allocation6] sm:$0x1] %vm106_vm9, %v313_v47 }
 0x14b   :  { %v142_v0 = vadd.f32 %v141_v48, %v140_v46  ;;  %p414_p11 = por %p413_p10, %p412_p9 }
 0x14d   :  { %v143_v49 = vrot.slane %v142_v0, 1  ;;  %p415_p12 = pnand %p414_p11, %p408_p8 }
 0x14f   :  { %v144_v21 = vadd.f32 %v143_v49, %v142_v0 }
 0x151   :  { %145 = vst.msk [vmem:[#allocation4] sm:$0x1] %vm106_vm9, %v144_v21 }
 0x152   :  { %418 = shalt.err (!%p415_p12)
}
 0x153   :  { %s419_s3 = scalar_lea.hbm %s657_s6, 16 }
 0x154   :  { %p420_p13 = scmp.ne.s32.totalorder %s657_s6, %s419_s3  ;;  %p423_p0 = scmp.lt.u32.totalorder %s419_s3, %s657_s6 }
 0x156   :  { %p425_p1 = pnand %p423_p0, %p420_p13 }
 0x158   :  { %428 = shalt.err (!%p425_p1)
}
 0x159   :  { %340 = dma.vmem_to_hbm [thread:$0]  %s338_s26, 16, %s657_s6, [#allocation5]  }
 0x15a   :  { %s429_s12 = scalar_lea.vmem %s618_s2, 16  ;;  %s433_s1 = scalar_lea.vmem %s618_s2, 32 }
 0x15b   :  { %p430_p2 = scmp.ne.s32.totalorder %s618_s2, %s429_s12  ;;  %p434_p3 = scmp.lt.s32.totalorder %s618_s2, %s618_s2 }
 0x15c   :  { %p435_p4 = scmp.lt.s32.totalorder %s433_s1, %s429_s12 }
 0x15e   :  { %p436_p5 = por %p435_p4, %p434_p3 }
 0x160   :  { %p437_p6 = pnand %p436_p5, %p430_p2 }
 0x162   :  { %440 = shalt.err (!%p437_p6)
}
 0x163   :  { %s441_s15 = scalar_lea.hbm %s658_s7, 16 }
 0x164   :  { %p442_p7 = scmp.ne.s32.totalorder %s658_s7, %s441_s15  ;;  %p445_p8 = scmp.lt.u32.totalorder %s441_s15, %s658_s7 }
 0x166   :  { %p447_p9 = pnand %p445_p8, %p442_p7 }
 0x168   :  { %450 = shalt.err (!%p447_p9)
}
 0x169   :  { %350 = dma.vmem_to_hbm [thread:$0]  %s618_s2, 16, %s658_s7, [#allocation5]  }
 0x16a   :  { %451 = dma.done.wait [#allocation3], 16  }
 0x16b   :  { %452 = vsyncadd [#allocation3], 4294967280 }
 0x16c   :  { %453 = dma.done.wait [#allocation5], 32  }
 0x16d   :  { %454 = vsyncadd [#allocation5], 4294967264 }
 0x16e   :  { %360 = vsyncpa [#allocation3], 1 }
 0x16f   :  { %361 = vsyncpa [#allocation5], 1 }

</bundles_post_ra>
